<compile_context>
chip_gen: v5e
topology: v5e:2x2
jax: 0.10.0
libtpu: 0.0.40
codegen_flags: <defaults>
</compile_context>

<pallas_src>
import numpy as np
import jax
import jax.numpy as jnp
from jax.experimental import pallas as pl
from jax.experimental.pallas import tpu as pltpu


GATHER_THRESHOLD = 1024  # n_codes at/above which the row-gather kernel is used


def _round_up(x, m):
    return (x + m - 1) // m * m


def _pad_rows(x, target_rows):
    pad = target_rows - x.shape[0]
    if pad == 0:
        return x
    return jnp.pad(x, ((0, pad),) + ((0, 0),) * (x.ndim - 1))


# ------------------------- small-table (two-hot MXU) ------------------------ #

def _onehot_lerp_kernel(ii_ref, w_ref, wtab_ref, out_ref):
    # ii_ref: (tb, 2) int32 indices, w_ref: (tb, 1) f32 lerp weight,
    # wtab_ref: (ncp, tn) bf16 (FULL code axis resident), out_ref: (tb, tn) f32.
    tb = out_ref.shape[0]
    ncp = wtab_ref.shape[0]
    ksub = min(ncp, 256)          # build/consume the two-hot in 128-lane sub-tiles

    ii = ii_ref[...]
    i0 = ii[:, 0:1]               # (tb, 1) int32
    i1 = ii[:, 1:2]
    w = w_ref[...]                # (tb, 1) f32

    acc = jnp.zeros(out_ref.shape, jnp.float32)
    for k0 in range(0, ncp, ksub):            # static trip count (<= 4)
        cols = k0 + jax.lax.broadcasted_iota(jnp.int32, (tb, ksub), 1)
        # Fused lerp: ((1-w)*oh0 + w*oh1) @ W == lerp(W[i0], W[i1], w). One matmul.
        oh = (jnp.where(cols == i0, 1.0 - w, 0.0)
              + jnp.where(cols == i1, w, 0.0)).astype(jnp.bfloat16)
        acc = acc + jnp.dot(oh, wtab_ref[k0:k0 + ksub, :],
                            preferred_element_type=jnp.float32)
    out_ref[...] = acc


def _onehot_lerp(ii, w, weight):
    B = ii.shape[0]
    n_codes, code_ch = weight.shape

    Cp = _round_up(code_ch, 128)                      # lane-dense output / MXU N
    ncp = _round_up(n_codes, 128)
    ksub = min(ncp, 256)
    ncp = _round_up(ncp, ksub)                        # ksub always divides ncp

    Bp8 = _round_up(B, 8)
    # >= 2 batch tiles whenever possible so v7x megacore can shard the batch axis.
    tb = min(128, max(8, _round_up((Bp8 + 1) // 2, 8)))
    Bp = _round_up(B, tb)
    tn = 256 if (Cp % 256 == 0) else 128              # tn always divides Cp

    wt = jnp.pad(weight,
                 ((0, ncp - n_codes), (0, Cp - code_ch))).astype(jnp.bfloat16)
    ii_p = _pad_rows(ii, Bp)
    w_p = _pad_rows(w, Bp)

    out = pl.pallas_call(
        _onehot_lerp_kernel,
        out_shape=jax.ShapeDtypeStruct((Bp, Cp), jnp.float32),
        grid_spec=pltpu.PrefetchScalarGridSpec(
            num_scalar_prefetch=0,
            grid=(Bp // tb, Cp // tn),                # no reduction axis
            in_specs=[
                pl.BlockSpec((tb, 2), lambda b, n: (b, 0)),
                pl.BlockSpec((tb, 1), lambda b, n: (b, 0)),
                pl.BlockSpec((ncp, tn), lambda b, n: (0, n)),
            ],
            out_specs=pl.BlockSpec((tb, tn), lambda b, n: (b, n)),
        ),
        compiler_params=pltpu.CompilerParams(
            dimension_semantics=("parallel", "parallel")),
    )(ii_p, w_p, wt)
    return out[:B, :code_ch]


def _onehot_lookup(i, weight):
    # Lookup == lerp with i1 = i0 and w = 0 (the two-hot degenerates to an exact
    # 0/1 one-hot, so the result is exactly the bf16-rounded table row).
    B = i.shape[0]
    ii = jnp.concatenate([i, i], axis=-1).astype(jnp.int32)
    w = jnp.zeros((B, 1), jnp.float32)
    return _onehot_lerp(ii, w, weight)


# ---------------------- large-table (manual-DMA row gather) ----------------- #

def _gather_lerp_kernel(i0_ref, i1_ref, w_ref, wtab_hbm, out_ref,
                        buf0, buf1, sem):
    # i0_ref/i1_ref: SMEM (Bp,) int32 row ids (scalar-prefetched).
    # w_ref: (R, 1) f32 lerp weights for this step's rows.
    # wtab_hbm: (n_codes, code_ch) weight table left in HBM (pl.ANY).
    # out_ref: (R, code_ch) f32.  buf0/buf1: VMEM (2, chunk, code_ch) double
    # buffers.  sem: DMA semaphores (2, 2, chunk) = [table, slot, row].
    b = pl.program_id(0)
    R = out_ref.shape[0]
    chunk = buf0.shape[1]
    n_chunks = R // chunk
    base = b * R

    def issue(c, slot):
        off = base + c * chunk
        for r in range(chunk):
            pltpu.make_async_copy(wtab_hbm.at[pl.ds(i0_ref[off + r], 1)],
                                  buf0.at[slot, pl.ds(r, 1)],
                                  sem.at[0, slot, r]).start()
            pltpu.make_async_copy(wtab_hbm.at[pl.ds(i1_ref[off + r], 1)],
                                  buf1.at[slot, pl.ds(r, 1)],
                                  sem.at[1, slot, r]).start()

    def wait(slot):
        for r in range(chunk):
            pltpu.make_async_copy(wtab_hbm.at[pl.ds(0, 1)],
                                  buf0.at[slot, pl.ds(r, 1)],
                                  sem.at[0, slot, r]).wait()
            pltpu.make_async_copy(wtab_hbm.at[pl.ds(0, 1)],
                                  buf1.at[slot, pl.ds(r, 1)],
                                  sem.at[1, slot, r]).wait()

    issue(0, 0)                                   # prime chunk 0 of this step
    w_all = w_ref[...]                            # (R, 1) f32
    for c in range(n_chunks):                     # static trip count
        slot = c & 1
        if c + 1 < n_chunks:
            issue(c + 1, 1 - slot)                # prefetch next chunk
        wait(slot)
        r0 = buf0[slot].astype(jnp.float32)       # (chunk, code_ch)
        r1 = buf1[slot].astype(jnp.float32)
        wc = w_all[c * chunk:(c + 1) * chunk, :]  # (chunk, 1)
        out_ref[pl.ds(c * chunk, chunk), :] = r0 + wc * (r1 - r0)


def _gather_lookup_kernel(i_ref, wtab_hbm, out_ref, buf, sem):
    b = pl.program_id(0)
    R = out_ref.shape[0]
    chunk = buf.shape[1]
    n_chunks = R // chunk
    base = b * R

    def issue(c, slot):
        off = base + c * chunk
        for r in range(chunk):
            pltpu.make_async_copy(wtab_hbm.at[pl.ds(i_ref[off + r], 1)],
                                  buf.at[slot, pl.ds(r, 1)],
                                  sem.at[slot, r]).start()

    def wait(slot):
        for r in range(chunk):
            pltpu.make_async_copy(wtab_hbm.at[pl.ds(0, 1)],
                                  buf.at[slot, pl.ds(r, 1)],
                                  sem.at[slot, r]).wait()

    issue(0, 0)
    for c in range(n_chunks):
        slot = c & 1
        if c + 1 < n_chunks:
            issue(c + 1, 1 - slot)
        wait(slot)
        out_ref[pl.ds(c * chunk, chunk), :] = buf[slot].astype(jnp.float32)


def _gather_lerp(ii, w, weight, rows_per_step=16, chunk=8):
    B = ii.shape[0]
    n_codes, code_ch = weight.shape
    R = min(rows_per_step, _round_up(B, chunk))   # rows per grid step (mult of 8)
    Bp = _round_up(B, R)

    i0 = _pad_rows(ii[:, 0], Bp)
    i1 = _pad_rows(ii[:, 1], Bp)
    w_p = _pad_rows(w, Bp)

    out = pl.pallas_call(
        _gather_lerp_kernel,
        out_shape=jax.ShapeDtypeStruct((Bp, code_ch), jnp.float32),
        grid_spec=pltpu.PrefetchScalarGridSpec(
            num_scalar_prefetch=2,                 # i0, i1 -> SMEM
            grid=(Bp // R,),
            in_specs=[
                pl.BlockSpec((R, 1), lambda b, i0r, i1r: (b, 0)),   # lerp weights
                pl.BlockSpec(memory_space=pl.ANY),                  # table in HBM
            ],
            out_specs=pl.BlockSpec((R, code_ch), lambda b, i0r, i1r: (b, 0)),
            scratch_shapes=[
                pltpu.VMEM((2, chunk, code_ch), weight.dtype),
                pltpu.VMEM((2, chunk, code_ch), weight.dtype),
                pltpu.SemaphoreType.DMA((2, 2, chunk)),
            ],
        ),
        compiler_params=pltpu.CompilerParams(
            dimension_semantics=("parallel",)),    # steps independent -> v7x megacore
    )(i0, i1, w_p, weight)
    return out[:B]


def _gather_lookup(i, weight, rows_per_step=16, chunk=8):
    B = i.shape[0]
    n_codes, code_ch = weight.shape
    R = min(rows_per_step, _round_up(B, chunk))
    Bp = _round_up(B, R)
    i_p = _pad_rows(i, Bp)

    out = pl.pallas_call(
        _gather_lookup_kernel,
        out_shape=jax.ShapeDtypeStruct((Bp, code_ch), jnp.float32),
        grid_spec=pltpu.PrefetchScalarGridSpec(
            num_scalar_prefetch=1,
            grid=(Bp // R,),
            in_specs=[pl.BlockSpec(memory_space=pl.ANY)],
            out_specs=pl.BlockSpec((R, code_ch), lambda b, ir: (b, 0)),
            scratch_shapes=[
                pltpu.VMEM((2, chunk, code_ch), weight.dtype),
                pltpu.SemaphoreType.DMA((2, chunk)),
            ],
        ),
        compiler_params=pltpu.CompilerParams(
            dimension_semantics=("parallel",)),
    )(i_p, weight)
    return out[:B]


# ----------------------------- Optcodes forward ----------------------------- #

def optcodes_forward(weight, idx, t=None, idx_map=None,
                     transform_code=False, training=True,
                     gather_threshold=GATHER_THRESHOLD):
    """Mirror of Optcodes.forward semantics (jit-able).

    weight: (n_codes, code_ch) float32 embedding table.
    idx:    (B, K) float32 — K==3 => [i0, i1, w] lerp path, K==1 => lookup path.
    """
    n_codes, code_ch = weight.shape

    if idx_map is not None:
        # TODO(synk): torch errors on out-of-range idx_map indices; JAX clamps/wraps.
        idx = idx_map[idx.astype(jnp.int32)].astype(idx.dtype)

    use_gather = n_codes >= gather_threshold

    if idx.shape[-1] != 1:
        # Lerp path: [i0, i1, w].
        ii = jnp.clip(idx[..., :2].astype(jnp.int32), 0, n_codes - 1)   # (B, 2)
        w = idx[..., 2:3].astype(jnp.float32)                           # (B, 1)
        if use_gather:
            codes = _gather_lerp(ii, w, weight)
        else:
            codes = _onehot_lerp(ii, w, weight)
    else:
        # Lookup path; unconditional clamp (jit-safe) replaces the data-dependent
        # torch clamp-and-warn (and avoids the original off-by-one `> n_codes`).
        i = jnp.clip(idx.astype(jnp.int32), 0, n_codes - 1)             # (B, 1)
        if use_gather:
            codes = _gather_lookup(i[:, 0], weight)
        else:
            codes = _onehot_lookup(i, weight)

    if not training:
        # torch checks `idx.max() < 0` over the FULL idx tensor (incl. the lerp
        # weight column) before any lookup; under jit we compute and select.
        all_neg = jnp.max(idx) < 0
        mean_code = jnp.broadcast_to(
            jnp.mean(weight, axis=0, keepdims=True), codes.shape)
        codes = jnp.where(all_neg, mean_code, codes)

    if transform_code:
        # codes.view(t.shape[0], 4, -1).flatten(start_dim=-2)
        codes = codes.reshape(t.shape[0], 4, -1).reshape(t.shape[0], -1)
    return codes


# ----------------------------------- main ----------------------------------- #

if __name__ == "__main__":
    key = jax.random.PRNGKey(0)
    n_codes, code_ch = 16, 32
    B = 256

    k_w, k_i0, k_i1, k_w2, k_is, k_bw, k_bi, k_bl = jax.random.split(key, 8)

    # Deterministic xavier-normal init of the embedding table.
    xavier_std = float(np.sqrt(2.0 / (n_codes + code_ch)))
    weight = xavier_std * jax.random.normal(k_w, (n_codes, code_ch), jnp.float32)

    fwd = jax.jit(optcodes_forward,
                  static_argnames=("transform_code", "training", "gather_threshold"))

    # ---- small-table lerp path (fused two-hot MXU kernel, bf16 operands) ----
    i0 = jax.random.randint(k_i0, (B, 1), 0, n_codes).astype(jnp.float32)
    i1 = jax.random.randint(k_i1, (B, 1), 0, n_codes).astype(jnp.float32)
    w = jax.random.uniform(k_w2, (B, 1), jnp.float32)
    idx3 = jnp.concatenate([i0, i1, w], axis=-1)            # (B, 3)

    out_lerp = jax.block_until_ready(fwd(weight, idx3))
    c0_ref = weight[i0[:, 0].astype(jnp.int32)]
    c1_ref = weight[i1[:, 0].astype(jnp.int32)]
    ref_lerp = c0_ref + w * (c1_ref - c0_ref)               # torch.lerp semantics
    # bf16 MXU operands -> loosened tolerance vs. the f32 reference.
    np.testing.assert_allclose(np.asarray(out_lerp), np.asarray(ref_lerp),
                               rtol=2e-2, atol=5e-3)

    # ---- small-table lookup path ----
    idx1 = jax.random.randint(k_is, (B, 1), 0, n_codes).astype(jnp.float32)
    out_lookup = jax.block_until_ready(fwd(weight, idx1))
    ref_lookup = weight[idx1[:, 0].astype(jnp.int32)]
    np.testing.assert_allclose(np.asarray(out_lookup), np.asarray(ref_lookup),
                               rtol=2e-2, atol=5e-3)

    # ---- large-table paths (manual-DMA batched row-gather kernels, f32) ----
    big_n, big_ch, Bb = 2048, 128, 32
    bw = jax.random.normal(k_bw, (big_n, big_ch), jnp.float32)
    b01 = jax.random.randint(k_bi, (Bb, 2), 0, big_n).astype(jnp.float32)
    blw = jax.random.uniform(k_bl, (Bb, 1), jnp.float32)
    bidx3 = jnp.concatenate([b01, blw], axis=-1)            # (Bb, 3)

    out_big = jax.block_until_ready(fwd(bw, bidx3))
    g0 = bw[b01[:, 0].astype(jnp.int32)]
    g1 = bw[b01[:, 1].astype(jnp.int32)]
    ref_big = g0 + blw * (g1 - g0)
    np.testing.assert_allclose(np.asarray(out_big), np.asarray(ref_big),
                               rtol=1e-5, atol=1e-5)

    bidx1 = b01[:, :1]                                      # (Bb, 1)
    out_big_l = jax.block_until_ready(fwd(bw, bidx1))
    ref_big_l = bw[bidx1[:, 0].astype(jnp.int32)]
    np.testing.assert_allclose(np.asarray(out_big_l), np.asarray(ref_big_l),
                               rtol=1e-5, atol=1e-5)

    print("KERNEL_OK")
</pallas_src>

<mosaic_0001>
module attributes {stable_mosaic.version = 11 : i64} {
  func.func @_onehot_lerp_kernel(%arg0: i32, %arg1: i32, %arg2: memref<128x2xi32, #tpu.memory_space<vmem>>, %arg3: memref<128x1xf32, #tpu.memory_space<vmem>>, %arg4: memref<128x128xbf16, #tpu.memory_space<vmem>>, %arg5: memref<128x128xf32, #tpu.memory_space<vmem>>) attributes {dimension_semantics = [#tpu.dimension_semantics<parallel>, #tpu.dimension_semantics<parallel>], iteration_bounds = array<i64: 2, 1>, scalar_prefetch = 0 : i64, scratch_operands = 0 : i64, tpu.core_type = #tpu.core_type<tc>, window_params = [{transform_indices = @transform_0, window_bounds = array<i64: 128, 2>}, {transform_indices = @transform_1, window_bounds = array<i64: 128, 1>}, {transform_indices = @transform_2, window_bounds = array<i64: 128, 128>}, {transform_indices = @transform_3, window_bounds = array<i64: 128, 128>}]} {
    %c0 = arith.constant 0 : index
    %c0_0 = arith.constant 0 : index
    %0 = vector.load %arg2[%c0, %c0_0] : memref<128x2xi32, #tpu.memory_space<vmem>>, vector<128x2xi32>
    %1 = vector.extract_strided_slice %0 {offsets = [0, 0], sizes = [128, 1], strides = [1, 1]} : vector<128x2xi32> to vector<128x1xi32>
    %2 = vector.extract_strided_slice %0 {offsets = [0, 1], sizes = [128, 1], strides = [1, 1]} : vector<128x2xi32> to vector<128x1xi32>
    %c0_1 = arith.constant 0 : index
    %c0_2 = arith.constant 0 : index
    %3 = vector.load %arg3[%c0_1, %c0_2] : memref<128x1xf32, #tpu.memory_space<vmem>>, vector<128x1xf32>
    %cst = arith.constant 0.000000e+00 : f32
    %4 = vector.broadcast %cst : f32 to vector<128x128xf32>
    %5 = tpu.iota {dimensions = array<i32: 1>} : vector<128x128xi32>
    %c0_i32 = arith.constant 0 : i32
    %6 = vector.broadcast %c0_i32 : i32 to vector<128x128xi32>
    %7 = arith.addi %6, %5 : vector<128x128xi32>
    %8 = vector.broadcast %1 : vector<128x1xi32> to vector<128x128xi32>
    %9 = arith.cmpi eq, %7, %8 : vector<128x128xi32>
    %cst_3 = arith.constant 1.000000e+00 : f32
    %10 = vector.broadcast %cst_3 : f32 to vector<128x1xf32>
    %11 = arith.subf %10, %3 : vector<128x1xf32>
    %cst_4 = arith.constant 0.000000e+00 : f32
    %12 = vector.shape_cast %11 : vector<128x1xf32> to vector<128x1xf32>
    %13 = vector.broadcast %12 : vector<128x1xf32> to vector<128x128xf32>
    %14 = vector.broadcast %cst_4 : f32 to vector<128x128xf32>
    %15 = arith.select %9, %13, %14 : vector<128x128xi1>, vector<128x128xf32>
    %16 = vector.broadcast %2 : vector<128x1xi32> to vector<128x128xi32>
    %17 = arith.cmpi eq, %7, %16 : vector<128x128xi32>
    %cst_5 = arith.constant 0.000000e+00 : f32
    %18 = vector.shape_cast %3 : vector<128x1xf32> to vector<128x1xf32>
    %19 = vector.broadcast %18 : vector<128x1xf32> to vector<128x128xf32>
    %20 = vector.broadcast %cst_5 : f32 to vector<128x128xf32>
    %21 = arith.select %17, %19, %20 : vector<128x128xi1>, vector<128x128xf32>
    %22 = arith.addf %15, %21 : vector<128x128xf32>
    %23 = arith.truncf %22 : vector<128x128xf32> to vector<128x128xbf16>
    %c0_6 = arith.constant 0 : index
    %c0_7 = arith.constant 0 : index
    %24 = vector.load %arg4[%c0_6, %c0_7] : memref<128x128xbf16, #tpu.memory_space<vmem>>, vector<128x128xbf16>
    %cst_8 = arith.constant dense<0.000000e+00> : vector<128x128xf32>
    %25 = tpu.matmul %23, %24, %cst_8 {dimension_numbers = #tpu.dot_dimension_numbers<[1], [0], [0], [1], [0, 0, 1, 1], [], []>} : vector<128x128xbf16>, vector<128x128xbf16>, vector<128x128xf32> -> vector<128x128xf32>
    %26 = arith.addf %4, %25 : vector<128x128xf32>
    %c0_9 = arith.constant 0 : index
    %c0_10 = arith.constant 0 : index
    %27 = vector.load %arg5[%c0_9, %c0_10] : memref<128x128xf32, #tpu.memory_space<vmem>>, vector<128x128xf32>
    tpu.vector_store %arg5[%c0_9, %c0_10], %26 {strides = array<i32>} : memref<128x128xf32, #tpu.memory_space<vmem>>, vector<128x128xf32>,
    return
  }
  func.func @transform_0(%arg0: i32, %arg1: i32) -> (i32, i32) {
    %c0_i32 = arith.constant 0 : i32
    %c0_i32_0 = arith.constant 0 : i32
    return %arg0, %c0_i32 : i32, i32
  }
  func.func @transform_1(%arg0: i32, %arg1: i32) -> (i32, i32) {
    %c0_i32 = arith.constant 0 : i32
    %c0_i32_0 = arith.constant 0 : i32
    return %arg0, %c0_i32 : i32, i32
  }
  func.func @transform_2(%arg0: i32, %arg1: i32) -> (i32, i32) {
    %c0_i32 = arith.constant 0 : i32
    %c0_i32_0 = arith.constant 0 : i32
    return %c0_i32, %arg1 : i32, i32
  }
  func.func @transform_3(%arg0: i32, %arg1: i32) -> (i32, i32) {
    %c0_i32 = arith.constant 0 : i32
    return %arg0, %arg1 : i32, i32
  }
}

</mosaic_0001>

<bundles_post_ra>
// kernel: optcodes_forward.1
= control target key start
LH: loop header
LB: loop body
LE: loop exit
PB: predicated region body
PF: predicated region fallthrough
CT: control target
= control target key end

     0   :  { %s1030_s12 = smov 0   ;;  %s1032_s13 = smov 0   ;;  %s1355_s0 = inlined_call_operand.vmem [shape: s32[256,2], index: 0, kind: input, shape index: {}]   ;;  %s1356_s1 = inlined_call_operand.vmem [shape: f32[256,1], index: 1, kind: input, shape index: {}]   ;;  %s1357_s2 = inlined_call_operand.vmem [shape: bf16[128,128], index: 2, kind: input, shape index: {}]   ;;  %s1358_s3 = inlined_call_operand.vmem [shape: f32[256,128], index: 3, kind: output, shape index: {}]  }
   0x1   :  { %s1034_s14 = smov 0  }
   0x2 LB: > { %s25_s15 = sadd.s32 1, %s1002_s13  ;;  %p863_p0 = scmp.ge.s32.totalorder %s1006_s14, 1  ;;  %s1006_s14 = sphi %s1034_s14, %s13_s14   ;;  %s1002_s13 = sphi %s1032_s13, %s1360_s13   ;;  %s998_s12 = sphi %s1030_s12, %s1359_s12  }
   0x3   : > { %p27_p1 = scmp.ge.s32.totalorder %s25_s15, 2  ;;  %p172_p2 = scmp.lt.s32.totalorder %s1006_s14, 3 }
   0x5   : > { %s1362_s15 = smov (%p27_p1, %s25_s15), 0  ;;  %p173_p3 = pnand %p863_p0, %p172_p2 }
   0x6   : > { %s864_s16 = sshll.u32 (!%p173_p3), %s998_s12, 4 }
   0x7   : > { %176 = sbr.rel (%p173_p3) target bundleno = 455 (0x1c7), region = 32  ;;  %p209_p4 = scmp.lt.s32.totalorder (!%p173_p3), %s864_s16, 31 }
   0xc   : > { %v1008_v0 = vmov 1   ;;  %v1009_v1 = vmov 0   ;;  %s1364_s16 = smov (!%p209_p4, %s864_s16), 31  ;;  %v265_v57 = vlaneseq }
   0xd   : > { %966 = vset.pattern.permute.xlu0 %v1008_v0  ;;  %963 = vset.pattern.permute.xlu2 %v1009_v1  ;;  %s1051_s17 = sshll.u32 %s1364_s16, 3 }
   0xe   : > { %962 = vset.pattern.permute.xlu1 %v1009_v1  ;;  %s1057_s20 = scalar_lea.vmem %s1355_s0, %s1051_s17  ;;  %s1114_s23 = scalar_lea.vmem %s1356_s1, %s1051_s17  ;;  %v1189_v58 = vand.u32 127, %v265_v57 }
   0xf   : > { %v245_v2 = vld [vmem:[%s1057_s20 + $0x60] sm:$0xff]  ;;  %v1064_v4 = vld [vmem:[%s1057_s20 + $0x10] sm:$0xff]  ;;  %v1069_v5 = vld [vmem:[%s1057_s20 + $0x28] sm:$0xff]  ;;  %s1328_s19 = scalar_lea.vmem %s1358_s3, %s1051_s17 }
  0x10   : > { %v1061_v3 = vld [vmem:[%s1057_s20 + $0x20] sm:$0xff]  ;;  %480 = vperm.xlu0 %966, %v245_v2   ;;  %274 = vperm.xlu1 %962, %v1064_v4   ;;  %v1072_v6 = vld [vmem:[%s1057_s20 + $0x18] sm:$0xff]  ;;  %v1088_v10 = vld [vmem:[%s1057_s20 + $0x8] sm:$0xff] }
  0x11   : > { %280 = vperm.xlu2 %963, %v1061_v3   ;;  %v1075_v7 = vld [vmem:[%s1057_s20] sm:$0xff]  ;;  %v1085_v9 = vld [vmem:[%s1057_s20 + $0x38] sm:$0xff]  ;;  %v1097_v12 = vld [vmem:[%s1057_s20 + $0x50] sm:$0xff] }
  0x12   : > { %v1082_v8 = vld [vmem:[%s1057_s20 + $0x40] sm:$0xff]  ;;  %v1094_v11 = vld [vmem:[%s1057_s20 + $0x58] sm:$0xff]  ;;  %v1100_v13 = vld [vmem:[%s1057_s20 + $0x30] sm:$0xff] }
  0x13   : > { %v1106_v14 = vld [vmem:[%s1057_s20 + $0x70] sm:$0xff]  ;;  %v246_v15 = vld [vmem:[%s1057_s20 + $0x68] sm:$0xff]  ;;  %v249_v18 = vld [vmem:[%s1114_s23] sm:$0xff] }
  0x14   : > { %v242_v16 = vld [vmem:[%s1057_s20 + $0x48] sm:$0xff]  ;;  %v331_v20 = vsub.f32 1.0, %v249_v18  ;;  %v1123_v21 = vld [vmem:[%s1114_s23 + $0x20] sm:$0xff]  ;;  %v1126_v22 = vld [vmem:[%s1114_s23 + $0x18] sm:$0xff] }
  0x15   : > { %v1118_v17 = vld [vmem:[%s1114_s23 + $0x8] sm:$0xff]  ;;  %v335_v23 = vsub.f32 1.0, %v1123_v21  ;;  %v334_v24 = vsub.f32 1.0, %v1126_v22  ;;  %v1131_v25 = vld [vmem:[%s1057_s20 + $0x78] sm:$0xff]  ;;  %v1138_v27 = vld [vmem:[%s1114_s23 + $0x30] sm:$0xff] }
  0x16   : > { %v332_v19 = vsub.f32 1.0, %v1118_v17  ;;  %v1135_v26 = vld [vmem:[%s1114_s23 + $0x38] sm:$0xff]  ;;  %v1141_v28 = vld [vmem:[%s1114_s23 + $0x10] sm:$0xff]  ;;  %v337_v30 = vsub.f32 1.0, %v1138_v27  ;;  %v258_v33 = vld [vmem:[%s1114_s23 + $0x48] sm:$0xff] }
  0x17   : > { %v338_v29 = vsub.f32 1.0, %v1135_v26  ;;  %v333_v31 = vsub.f32 1.0, %v1141_v28  ;;  %v1147_v32 = vld [vmem:[%s1114_s23 + $0x50] sm:$0xff]  ;;  %v254_v34 = vld [vmem:[%s1114_s23 + $0x28] sm:$0xff]  ;;  %v340_v36 = vsub.f32 1.0, %v258_v33  ;;  %v261_v39 = vld [vmem:[%s1114_s23 + $0x60] sm:$0xff] }
  0x18   : > { %967 = vset.pattern.permute.xlu0 %v1009_v1  ;;  %277 = vperm.xlu1 %962, %v1072_v6   ;;  %v341_v35 = vsub.f32 1.0, %v1147_v32  ;;  %v336_v37 = vsub.f32 1.0, %v254_v34  ;;  %v262_v38 = vld [vmem:[%s1114_s23 + $0x68] sm:$0xff]  ;;  %v257_v40 = vld [vmem:[%s1114_s23 + $0x40] sm:$0xff]  ;;  %v343_v42 = vsub.f32 1.0, %v261_v39  ;;  %v1156_v44 = vld [vmem:[%s1114_s23 + $0x58] sm:$0xff] }
  0x19   : > { %283 = vperm.xlu2 %963, %v1069_v5   ;;  %268 = vperm.xlu0 %967, %v1075_v7   ;;  %v344_v41 = vsub.f32 1.0, %v262_v38  ;;  %v339_v43 = vsub.f32 1.0, %v257_v40  ;;  %v342_v45 = vsub.f32 1.0, %v1156_v44  ;;  %v263_v46 = vld [vmem:[%s1114_s23 + $0x70] sm:$0xff]  ;;  %v264_v63 = vld [vmem:[%s1114_s23 + $0x78] sm:$0xff] }
  0x1a   : > { %v345_v47 = vsub.f32 1.0, %v263_v46 }
  0x20   : > { %289 = vperm.xlu1 %962, %v1085_v9  }
  0x21   : > { %292 = vperm.xlu2 %963, %v1082_v8   ;;  %271 = vperm.xlu0 %967, %v1088_v10  }
  0x28   : > { %298 = vperm.xlu1 %962, %v1097_v12  }
  0x29   : > { %301 = vperm.xlu2 %963, %v1094_v11   ;;  %286 = vperm.xlu0 %967, %v1100_v13  }
  0x30   : > { %307 = vperm.xlu1 %962, %v246_v15  }
  0x31   : > { %310 = vperm.xlu2 %963, %v1106_v14   ;;  %295 = vperm.xlu0 %967, %v242_v16  }
  0x38   : > { %349 = vperm.xlu1 %962, %v331_v20   ;;  %v910_v20 = vld [vmem:[%s1357_s2 + $0x30] sm:$0xff] }
  0x39   : > { %354 = vperm.xlu2 %963, %v332_v19   ;;  %304 = vperm.xlu0 %967, %v245_v2  }
  0x40   : > { %364 = vperm.xlu1 %962, %v334_v24  }
  0x41   : > { %369 = vperm.xlu2 %963, %v335_v23   ;;  %313 = vperm.xlu0 %967, %v1131_v25  }
  0x48   : > { %379 = vperm.xlu1 %962, %v337_v30  }
  0x49   : > { %384 = vperm.xlu2 %963, %v338_v29   ;;  %359 = vperm.xlu0 %967, %v333_v31   ;;  %v907_v29 = vld [vmem:[%s1357_s2 + $0x18] sm:$0xff] }
  0x50   : > { %394 = vperm.xlu1 %962, %v340_v36  }
  0x51   : > { %399 = vperm.xlu2 %963, %v341_v35   ;;  %374 = vperm.xlu0 %967, %v336_v37  }
  0x58   : > { %409 = vperm.xlu1 %962, %v343_v42  }
  0x59   : > { %414 = vperm.xlu2 %963, %v344_v41   ;;  %389 = vperm.xlu0 %967, %v339_v43  }
  0x60   : > { %964 = vset.pattern.permute.xlu1 %v1008_v0 }
  0x61   : > { %965 = vset.pattern.permute.xlu2 %v1008_v0  ;;  %468 = vperm.xlu1 %964, %v1082_v8   ;;  %v346_v8 = vsub.f32 1.0, %v264_v63 }
  0x62   : > { %471 = vperm.xlu2 %965, %v242_v16   ;;  %404 = vperm.xlu0 %967, %v342_v45  }
  0x69   : > { %483 = vperm.xlu1 %964, %v246_v15  }
  0x6a   : > { %968 = vset.pattern.permute.xlu2 %v1009_v1  ;;  %419 = vperm.xlu0 %967, %v345_v47  }
  0x6b   : > { %v281_v48 = vpop.permute.xlu2 %280  ;;  %549 = vperm.xlu2 %968, %v257_v40  }
  0x6c   : > { %vm319_vm1 = vcmp.eq.s32.totalorder %v1189_v58, %v281_v48 }
  0x71   : > { %969 = vset.pattern.permute.xlu1 %v1009_v1 }
  0x72   : > { %574 = vperm.xlu0 %967, %v262_v38   ;;  %554 = vperm.xlu1 %969, %v258_v33  }
  0x73   : > { %v1165_v49 = vpop.permute.xlu2 %283  ;;  %569 = vperm.xlu2 %968, %v261_v39  }
  0x7a   : > { %509 = vperm.xlu0 %967, %v249_v18   ;;  %970 = vset.pattern.permute.xlu1 %v1008_v0 }
  0x7b   : > { %v1167_v50 = vpop.permute.xlu2 %292  ;;  %971 = vset.pattern.permute.xlu2 %v1008_v0  ;;  %444 = vperm.xlu1 %970, %v1075_v7  }
  0x7c   : > { %447 = vperm.xlu2 %971, %v1088_v10   ;;  %vm323_vm12 = vcmp.eq.s32.totalorder %v1189_v58, %v1167_v50 }
  0x82   : > { %534 = vperm.xlu0 %967, %v254_v34   ;;  %v1175_v52 = vpop.permute.xlu0 %480  ;;  %v1177_v53 = vpop.permute.xlu1 %274  ;;  %v905_v34 = vld [vmem:[%s1357_s2 + $0x8] sm:$0xff] }
  0x83   : > { %v1173_v51 = vpop.permute.xlu2 %301  ;;  %456 = vperm.xlu1 %970, %v1061_v3   ;;  %vm317_vm7 = vcmp.eq.s32.totalorder %v1189_v58, %v1177_v53  ;;  %vm503_vm11 = vcmp.eq.s32.totalorder %v1189_v58, %v1175_v52 }
  0x84   : > { %459 = vperm.xlu2 %971, %v1069_v5   ;;  %vm326_vm8 = vcmp.eq.s32.totalorder %v1189_v58, %v1173_v51 }
  0x8a   : > { %579 = vperm.xlu0 %967, %v263_v46   ;;  %v1183_v55 = vpop.permute.xlu1 %277 }
  0x8b   : > { %v1181_v54 = vpop.permute.xlu2 %310  ;;  %v269_v56 = vpop.permute.xlu0 %268  ;;  %972 = vset.pattern.permute.xlu1 %v1009_v1  ;;  %vm318_vm5 = vcmp.eq.s32.totalorder %v1189_v58, %v1183_v55 }
  0x8c   : > { %973 = vset.pattern.permute.xlu2 %v1009_v1  ;;  %514 = vperm.xlu1 %972, %v1118_v17   ;;  %vm315_vm3 = vcmp.eq.s32.totalorder %v1189_v58, %v269_v56  ;;  %vm329_vm9 = vcmp.eq.s32.totalorder %v1189_v58, %v1181_v54 }
  0x8d   : > { %529 = vperm.xlu2 %973, %v1123_v21   ;;  %v909_v21 = vld [vmem:[%s1357_s2 + $0x28] sm:$0xff] }
  0x92   : > { %978 = vset.pattern.permute.xlu0 %v1008_v0  ;;  %v290_v60 = vpop.permute.xlu1 %289 }
  0x93   : > { %v355_v59 = vpop.permute.xlu2 %354  ;;  %486 = vperm.xlu0 %978, %v1106_v14   ;;  %v272_v61 = vpop.permute.xlu0 %271  ;;  %vm322_vm2 = vcmp.eq.s32.totalorder %v1189_v58, %v290_v60 }
  0x94   : > { %vm316_vm0 = vcmp.eq.s32.totalorder %v1189_v58, %v272_v61  ;;  %974 = vset.pattern.permute.xlu1 %v1008_v0 }
  0x95   : > { %v1194_v62 = vsel %vm316_vm0, %v355_v59, 0.0  ;;  %975 = vset.pattern.permute.xlu2 %v1008_v0  ;;  %474 = vperm.xlu1 %974, %v1097_v12  }
  0x96   : > { %477 = vperm.xlu2 %975, %v1094_v11  }
  0x9a   : > { %v299_v5 = vpop.permute.xlu1 %298 }
  0x9b   : > { %v370_v2 = vpop.permute.xlu2 %369  ;;  %v287_v7 = vpop.permute.xlu0 %286  ;;  %465 = vperm.xlu0 %978, %v1085_v9   ;;  %v911_v9 = vld [vmem:[%s1357_s2 + $0x38] sm:$0xff]  ;;  %vm325_vm4 = vcmp.eq.s32.totalorder %v1189_v58, %v299_v5 }
  0x9c   : > { %v1202_v3 = vsel %vm319_vm1, %v370_v2, 0.0  ;;  %914 = vmatpush.bf16.msra.mxu3 %v911_v9  ;;  %913 = vmatpush.bf16.msra.mxu2 %v911_v9  ;;  %vm321_vm6 = vcmp.eq.s32.totalorder %v1189_v58, %v287_v7 }
  0x9d   : > { %489 = vperm.xlu1 %974, %v1131_v25   ;;  %912 = vmatpush.bf16.msra.mxu1 %v911_v9 }
  0x9e   : > { %976 = vset.pattern.permute.xlu2 %v1009_v1  ;;  %691 = vmatpush.bf16.msra.mxu0 %v911_v9 }
  0x9f   : > { %424 = vperm.xlu2 %976, %v346_v8  }
  0xa0   : > { %917 = vmatpush.bf16.msra.mxu3 %v910_v20  ;;  %916 = vmatpush.bf16.msra.mxu2 %v910_v20 }
  0xa1   : > { %915 = vmatpush.bf16.msra.mxu1 %v910_v20 }
  0xa2   : > { %v1210_v12 = vpop.permute.xlu1 %307  ;;  %692 = vmatpush.bf16.msra.mxu0 %v910_v20 }
  0xa3   : > { %v385_v10 = vpop.permute.xlu2 %384  ;;  %v1212_v14 = vpop.permute.xlu0 %295  ;;  %983 = vset.pattern.permute.xlu0 %v1009_v1  ;;  %vm328_vm13 = vcmp.eq.s32.totalorder %v1189_v58, %v1210_v12 }
  0xa4   : > { %v1208_v11 = vsel %vm322_vm2, %v385_v10, 0.0  ;;  %920 = vmatpush.bf16.msra.mxu3 %v909_v21  ;;  %919 = vmatpush.bf16.msra.mxu2 %v909_v21  ;;  %vm324_vm14 = vcmp.eq.s32.totalorder %v1189_v58, %v1212_v14 }
  0xa5   : > { %977 = vset.pattern.permute.xlu1 %v1009_v1  ;;  %918 = vmatpush.bf16.msra.mxu1 %v909_v21 }
  0xa6   : > { %559 = vperm.xlu1 %977, %v1147_v32   ;;  %693 = vmatpush.bf16.msra.mxu0 %v909_v21 }
  0xa7   : > { %564 = vperm.xlu2 %976, %v1156_v44  }
  0xaa   : > { %v350_v17 = vpop.permute.xlu1 %349 }
  0xab   : > { %v400_v15 = vpop.permute.xlu2 %399  ;;  %v1225_v18 = vpop.permute.xlu0 %304  ;;  %v1227_v19 = vsel %vm315_vm3, %v350_v17, 0.0  ;;  %vm320_vm3 = vcmp.eq.s32.totalorder %v1189_v58, %v1165_v49 }
  0xac   : > { %v1223_v16 = vsel %vm325_vm4, %v400_v15, 0.0  ;;  %vm327_vm15 = vcmp.eq.s32.totalorder %v1189_v58, %v1225_v18 }
  0xae   : > { %584 = vperm.xlu1 %977, %v264_v63  }
  0xaf   : > { %979 = vset.pattern.permute.xlu2 %v1008_v0 }
  0xb0   : > { %450 = vperm.xlu2 %979, %v1064_v4   ;;  %v908_v4 = vld [vmem:[%s1357_s2 + $0x20] sm:$0xff] }
  0xb1   : > { %923 = vmatpush.bf16.msra.mxu3 %v908_v4  ;;  %922 = vmatpush.bf16.msra.mxu2 %v908_v4 }
  0xb2   : > { %v365_v23 = vpop.permute.xlu1 %364  ;;  %921 = vmatpush.bf16.msra.mxu1 %v908_v4  ;;  %694 = vmatpush.bf16.msra.mxu0 %v908_v4 }
  0xb3   : > { %v1239_v24 = vpop.permute.xlu0 %313  ;;  %v1241_v25 = vsel %vm318_vm5, %v365_v23, 0.0  ;;  %v415_v30 = vpop.permute.xlu2 %414 }
  0xb4   : > { %v440_v45 = vsel %vm328_vm13, %v415_v30, 0.0 }
  0xb5   : > { %926 = vmatpush.bf16.msra.mxu3 %v907_v29  ;;  %925 = vmatpush.bf16.msra.mxu2 %v907_v29 }
  0xb6   : > { %980 = vset.pattern.permute.xlu1 %v1008_v0  ;;  %924 = vmatpush.bf16.msra.mxu1 %v907_v29 }
  0xb7   : > { %453 = vperm.xlu1 %980, %v1072_v6   ;;  %v906_v6 = vld [vmem:[%s1357_s2 + $0x10] sm:$0xff]  ;;  %695 = vmatpush.bf16.msra.mxu0 %v907_v29 }
  0xb8   : > { %462 = vperm.xlu2 %979, %v1100_v13  }
  0xb9   : > { %929 = vmatpush.bf16.msra.mxu3 %v906_v6  ;;  %928 = vmatpush.bf16.msra.mxu2 %v906_v6 }
  0xba   : > { %v380_v31 = vpop.permute.xlu1 %379  ;;  %927 = vmatpush.bf16.msra.mxu1 %v906_v6 }
  0xbb   : > { %v360_v0 = vpop.permute.xlu0 %359  ;;  %v1255_v32 = vsel %vm321_vm6, %v380_v31, 0.0  ;;  %696 = vmatpush.bf16.msra.mxu0 %v906_v6 }
  0xbc   : > { %v1257_v13 = vsel %vm317_vm7, %v360_v0, 0.0  ;;  %v472_v33 = vpop.permute.xlu2 %471 }
  0xbd   : > { %932 = vmatpush.bf16.msra.mxu3 %v905_v34  ;;  %931 = vmatpush.bf16.msra.mxu2 %v905_v34  ;;  %vm500_vm1 = vcmp.eq.s32.totalorder %v1189_v58, %v472_v33 }
  0xbe   : > { %930 = vmatpush.bf16.msra.mxu1 %v905_v34 }
  0xbf   : > { %981 = vset.pattern.permute.xlu1 %v1009_v1  ;;  %697 = vmatpush.bf16.msra.mxu0 %v905_v34 }
  0xc0   : > { %982 = vset.pattern.permute.xlu2 %v1009_v1  ;;  %519 = vperm.xlu1 %981, %v1141_v28   ;;  %v904_v1 = vld [vmem:[%s1357_s2] sm:$0xff] }
  0xc1   : > { %524 = vperm.xlu2 %982, %v1126_v22   ;;  %935 = vmatpush.bf16.msra.mxu3 %v904_v1 }
  0xc2   : > { %v395_v35 = vpop.permute.xlu1 %394  ;;  %934 = vmatpush.bf16.msra.mxu2 %v904_v1  ;;  %933 = vmatpush.bf16.msra.mxu1 %v904_v1 }
  0xc3   : > { %v1269_v36 = vpop.permute.xlu0 %374  ;;  %698 = vmatpush.bf16.msra.mxu0 %v904_v1  ;;  %v436_v48 = vsel %vm324_vm14, %v395_v35, 0.0 }
  0xc4   : > { %v432_v14 = vsel %vm320_vm3, %v1269_v36, 0.0 }
  0xc5   : > { %v550_v37 = vpop.permute.xlu2 %549 }
  0xc8   : > { %539 = vperm.xlu1 %981, %v1138_v27  }
  0xc9   : > { %544 = vperm.xlu2 %982, %v1135_v26  }
  0xca   : > { %v410_v22 = vpop.permute.xlu1 %409 }
  0xcb   : > { %v390_v28 = vpop.permute.xlu0 %389  ;;  %v439_v51 = vsel %vm327_vm15, %v410_v22, 0.0 }
  0xcc   : > { %v435_v53 = vsel %vm323_vm12, %v390_v28, 0.0 }
  0xcd   : > { %v570_v41 = vpop.permute.xlu2 %569 }
  0xce   : > { %v599_v44 = vsel %vm503_vm11, %v570_v41, 0.0 }
  0xcf   : > { %v615_v54 = vadd.f32 %v599_v44, %v439_v51 }
  0xd3   : > { %v469_v38 = vpop.permute.xlu1 %468 }
  0xd4   : > { %v405_v39 = vpop.permute.xlu0 %404  ;;  %vm499_vm10 = vcmp.eq.s32.totalorder %v1189_v58, %v469_v38 }
  0xd5   : > { %v1278_v40 = vsel %vm326_vm8, %v405_v39, 0.0  ;;  %v595_v46 = vsel %vm499_vm10, %v550_v37, 0.0  ;;  %vm330_vm10 = vcmp.eq.s32.totalorder %v1189_v58, %v1239_v24 }
  0xd6   : > { %v448_v43 = vpop.permute.xlu2 %447  ;;  %v611_v57 = vadd.f32 %v595_v46, %v435_v53 }
  0xd7   : > { %vm492_vm6 = vcmp.eq.s32.totalorder %v1189_v58, %v448_v43 }
  0xdb   : > { %v484_v26 = vpop.permute.xlu1 %483 }
  0xdc   : > { %v420_v27 = vpop.permute.xlu0 %419  ;;  %vm504_vm0 = vcmp.eq.s32.totalorder %v1189_v58, %v484_v26 }
  0xdd   : > { %v1282_v42 = vsel %vm329_vm9, %v420_v27, 0.0 }
  0xde   : > { %v460_v61 = vpop.permute.xlu2 %459 }
  0xdf   : > { %vm496_vm2 = vcmp.eq.s32.totalorder %v1189_v58, %v460_v61 }
  0xe4   : > { %v575_v47 = vpop.permute.xlu0 %574  ;;  %v555_v52 = vpop.permute.xlu1 %554 }
  0xe5   : > { %v600_v50 = vsel %vm504_vm0, %v575_v47, 0.0  ;;  %v596_v56 = vsel %vm500_vm1, %v555_v52, 0.0 }
  0xe6   : > { %v616_v55 = vadd.f32 %v600_v50, %v440_v45  ;;  %v612_v59 = vadd.f32 %v596_v56, %v436_v48 }
  0xe7   : > { %v530_v7 = vpop.permute.xlu2 %529 }
  0xe8   : > { %v625_v60 = vpack.c.bf16 %v616_v55, %v615_v54  ;;  %v623_v63 = vpack.c.bf16 %v612_v59, %v611_v57 }
  0xea   : > { %729 = vmatmul.bf16.vlgmr.msra.gmra.mxu3 %v625_v60  ;;  %719 = vmatmul.bf16.vlgmr.msra.gmra.mxu2 %v623_v63 }
  0xec   : > { %v510_v2 = vpop.permute.xlu0 %509 }
  0xed   : > { %v445_v5 = vpop.permute.xlu1 %444 }
  0xee   : > { %vm491_vm5 = vcmp.eq.s32.totalorder %v1189_v58, %v445_v5 }
  0xef   : > { %v587_v21 = vsel %vm491_vm5, %v510_v2, 0.0 }
  0xf0   : > { %v478_v20 = vpop.permute.xlu2 %477  ;;  %v603_v49 = vadd.f32 %v587_v21, %v1227_v19 }
  0xf1   : > { %vm502_vm7 = vcmp.eq.s32.totalorder %v1189_v58, %v478_v20 }
  0xf4   : > { %v535_v8 = vpop.permute.xlu0 %534 }
  0xf5   : > { %v592_v10 = vsel %vm496_vm2, %v535_v8, 0.0  ;;  %v457_v12 = vpop.permute.xlu1 %456 }
  0xf6   : > { %vm495_vm4 = vcmp.eq.s32.totalorder %v1189_v58, %v457_v12  ;;  %v608_v15 = vadd.f32 %v592_v10, %v432_v14 }
  0xf7   : > { %v591_v9 = vsel %vm495_vm4, %v530_v7, 0.0 }
  0xf8   : > { %v607_v17 = vadd.f32 %v591_v9, %v1202_v3 }
  0xf9   : > { %v425_v31 = vpop.permute.xlu2 %424 }
  0xfa   : > { %v621_v18 = vpack.c.bf16 %v608_v15, %v607_v17  ;;  %v442_v39 = vsel %vm330_vm10, %v425_v31, 0.0 }
  0xfc   : > { %709 = vmatmul.bf16.vlgmr.msra.gmra.mxu1 %v621_v18  ;;  %v580_v6 = vpop.permute.xlu0 %579 }
  0xfe   : > { %v515_v23 = vpop.permute.xlu1 %514 }
  0xff   : > { %v588_v4 = vsel %vm492_vm6, %v515_v23, 0.0 }
 0x100   : > { %v604_v29 = vadd.f32 %v588_v4, %v1194_v62 }
 0x101   : > { %v565_v33 = vpop.permute.xlu2 %564 }
 0x102   : > { %v619_v30 = vpack.c.bf16 %v604_v29, %v603_v49  ;;  %v598_v34 = vsel %vm502_vm7, %v565_v33, 0.0 }
 0x103   : > { %v614_v19 = vadd.f32 %v598_v34, %v1278_v40 }
 0x104   : > { %699 = vmatmul.bf16.vlgmr.msra.gmra.mxu0 %v619_v30 }
 0x105   : > { %v487_v1 = vpop.permute.xlu0 %486 }
 0x106   : > { %vm505_vm9 = vcmp.eq.s32.totalorder %v1189_v58, %v487_v1 }
 0x107   : > { %v475_v0 = vpop.permute.xlu1 %474  ;;  %v601_v37 = vsel %vm505_vm9, %v580_v6, 0.0 }
 0x108   : > { %vm501_vm8 = vcmp.eq.s32.totalorder %v1189_v58, %v475_v0  ;;  %v617_v26 = vadd.f32 %v601_v37, %v1282_v42 }
 0x10a   : > { %v451_v35 = vpop.permute.xlu2 %450 }
 0x10b   : > { %vm493_vm13 = vcmp.eq.s32.totalorder %v1189_v58, %v451_v35 }
 0x10d   : > { %v466_v24 = vpop.permute.xlu0 %465 }
 0x10e   : > { %vm498_vm14 = vcmp.eq.s32.totalorder %v1189_v58, %v466_v24 }
 0x10f   : > { %v490_v3 = vpop.permute.xlu1 %489 }
 0x110   : > { %vm506_vm11 = vcmp.eq.s32.totalorder %v1189_v58, %v490_v3 }
 0x112   : > { %v463_v27 = vpop.permute.xlu2 %462 }
 0x113   : > { %vm497_vm15 = vcmp.eq.s32.totalorder %v1189_v58, %v463_v27 }
 0x118   : > { %v560_v36 = vpop.permute.xlu1 %559 }
 0x119   : > { %v597_v22 = vsel %vm501_vm8, %v560_v36, 0.0 }
 0x11a   : > { %v613_v62 = vadd.f32 %v597_v22, %v1223_v16 }
 0x11b   : > { %v525_v44 = vpop.permute.xlu2 %524 }
 0x11c   : > { %v624_v28 = vpack.c.bf16 %v614_v19, %v613_v62 }
 0x11e   : > { %724 = vmatmul.bf16.gmra.mxu2 %v624_v28 }
 0x120   : > { %v585_v38 = vpop.permute.xlu1 %584 }
 0x121   : > { %v602_v41 = vsel %vm506_vm11, %v585_v38, 0.0 }
 0x122   : > { %v618_v43 = vadd.f32 %v602_v41, %v442_v39 }
 0x123   : > { %v545_v42 = vpop.permute.xlu2 %544 }
 0x124   : > { %v626_v40 = vpack.c.bf16 %v618_v43, %v617_v26  ;;  %v594_v52 = vsel %vm498_vm14, %v545_v42, 0.0 }
 0x125   : > { %v610_v55 = vadd.f32 %v594_v52, %v1208_v11 }
 0x126   : > { %734 = vmatmul.bf16.gmra.mxu3 %v626_v40 }
 0x129   : > { %v454_v16 = vpop.permute.xlu1 %453 }
 0x12a   : > { %vm494_vm12 = vcmp.eq.s32.totalorder %v1189_v58, %v454_v16 }
 0x12b   : > { %v590_v45 = vsel %vm494_vm12, %v525_v44, 0.0 }
 0x12c   : > { %v606_v48 = vadd.f32 %v590_v45, %v1241_v25 }
 0x132   : > { %v520_v46 = vpop.permute.xlu1 %519 }
 0x133   : > { %v589_v47 = vsel %vm493_vm13, %v520_v46, 0.0 }
 0x134   : > { %v605_v51 = vadd.f32 %v589_v47, %v1257_v13 }
 0x136   : > { %v620_v50 = vpack.c.bf16 %v606_v48, %v605_v51 }
 0x138   : > { %704 = vmatmul.bf16.gmra.mxu0 %v620_v50 }
 0x13a   : > { %v540_v53 = vpop.permute.xlu1 %539 }
 0x13b   : > { %v593_v54 = vsel %vm497_vm15, %v540_v53, 0.0 }
 0x13c   : > { %v609_v56 = vadd.f32 %v593_v54, %v1255_v32 }
 0x13e   : > { %v622_v57 = vpack.c.bf16 %v610_v55, %v609_v56 }
 0x140   : > { %714 = vmatmul.bf16.gmra.mxu1 %v622_v57 }
 0x16d   : > { %v730_v58 = vpop.f32.mrf.mxu3  ;;  %v720_v11 = vpop.f32.mrf.mxu2 }
 0x16e   : > { %752 = vst [vmem:[%s1328_s19 + $0x60] sm:$0xff] %v730_v58 }
 0x16f   : > { %748 = vst [vmem:[%s1328_s19 + $0x40] sm:$0xff] %v720_v11 }
 0x175   : > { %v732_v25 = vpop.f32.mrf.mxu3  ;;  %v722_v32 = vpop.f32.mrf.mxu2 }
 0x176   : > { %753 = vst [vmem:[%s1328_s19 + $0x68] sm:$0xff] %v732_v25 }
 0x177   : > { %749 = vst [vmem:[%s1328_s19 + $0x48] sm:$0xff] %v722_v32 }
 0x179   : > { %v710_v13 = vpop.f32.mrf.mxu1 }
 0x17a   : > { %744 = vst [vmem:[%s1328_s19 + $0x20] sm:$0xff] %v710_v13 }
 0x181   : > { %v700_v59 = vpop.f32.mrf.mxu0  ;;  %v712_v60 = vpop.f32.mrf.mxu1 }
 0x182   : > { %740 = vst [vmem:[%s1328_s19] sm:$0xff] %v700_v59 }
 0x183   : > { %745 = vst [vmem:[%s1328_s19 + $0x28] sm:$0xff] %v712_v60 }
 0x189   : > { %v702_v61 = vpop.f32.mrf.mxu0 }
 0x18a   : > { %741 = vst [vmem:[%s1328_s19 + $0x8] sm:$0xff] %v702_v61 }
 0x1a1   : > { %v725_v63 = vpop.f32.mrf.mxu2 }
 0x1a2   : > { %750 = vst [vmem:[%s1328_s19 + $0x50] sm:$0xff] %v725_v63 }
 0x1a9   : > { %v727_v2 = vpop.f32.mrf.mxu2  ;;  %v735_v5 = vpop.f32.mrf.mxu3 }
 0x1aa   : > { %751 = vst [vmem:[%s1328_s19 + $0x58] sm:$0xff] %v727_v2 }
 0x1ab   : > { %754 = vst [vmem:[%s1328_s19 + $0x70] sm:$0xff] %v735_v5 }
 0x1b1   : > { %v737_v7 = vpop.f32.mrf.mxu3 }
 0x1b2   : > { %755 = vst [vmem:[%s1328_s19 + $0x78] sm:$0xff] %v737_v7 }
 0x1b5   : > { %v705_v8 = vpop.f32.mrf.mxu0 }
 0x1b6   : > { %742 = vst [vmem:[%s1328_s19 + $0x10] sm:$0xff] %v705_v8 }
 0x1bd   : > { %v707_v10 = vpop.f32.mrf.mxu0  ;;  %v715_v12 = vpop.f32.mrf.mxu1 }
 0x1be   : > { %743 = vst [vmem:[%s1328_s19 + $0x18] sm:$0xff] %v707_v10 }
 0x1bf   : > { %746 = vst [vmem:[%s1328_s19 + $0x30] sm:$0xff] %v715_v12 }
 0x1c5   : > { %v717_v14 = vpop.f32.mrf.mxu1 }
 0x1c6   : > { %747 = vst [vmem:[%s1328_s19 + $0x38] sm:$0xff] %v717_v14 }
 0x1c7 PF: > { %s13_s14 = sadd.s32 1, %s1006_s14   ;;  %s1359_s12 = smov %s1002_s13 }
 0x1c8   : > { %p10_p5 = scmp.ge.s32.totalorder %s13_s14, 4   ;;  %s1360_s13 = smov %s1362_s15 }
 0x1ca   :  { %12 = sbr.rel (!%p10_p5) target bundleno = 2 (0x2), region = 68 }

</bundles_post_ra>
